<compile_context>
chip_gen: v7x
topology: tpu7x:2x2x1
jax: 0.10.0
libtpu: 0.0.40
codegen_flags: <defaults>
</compile_context>

<pallas_src>
import functools
import math

import jax
import jax.numpy as jnp
from jax.experimental import pallas as pl
from jax.experimental.pallas import tpu as pltpu


def _round_up(n, m):
    return (n + m - 1) // m * m


def _mlp_kernel(x_ref, w1_ref, b1_ref, w2_ref, b2_ref, o_ref, *, precision):
    # Layer 1 on the MXU.  x_ref packs P batch rows per (lane-dense) row and w1_ref is
    # kron(I_P, W1), so h[r, g*H + j] = sum_d x[r*P + g, d] * W1[d, j].
    h = jnp.dot(x_ref[...], w1_ref[...],
                preferred_element_type=jnp.float32, precision=precision)
    h = jnp.maximum(h + b1_ref[...], 0.0)                    # (tile_r, P*H)
    # Layer 2: block-diagonal (P*H, P) contraction -> one scalar per packed (row, group).
    # The result lands directly in the packed output layout (no relayout / transpose).
    y = jnp.dot(h, w2_ref[...],
                preferred_element_type=jnp.float32, precision=precision)
    o_ref[...] = (y + b2_ref[0, 0]).astype(o_ref.dtype)


def linear_lag_forward(x, w1, b1, w2, b2, *, tile_b=32768, precision=None):
    """LinearLagModel.forward.

    x:  (B, input_dim) float32
    w1: (input_dim, hidden_dim)   (transposed vs torch's (hidden_dim, input_dim))
    b1: (hidden_dim,)
    w2: (hidden_dim, 1)
    b2: (1,)
    precision: pass jax.lax.Precision.HIGHEST for strict f32 parity with PyTorch.
    returns (B, 1) float32

    Note: this kernel is HBM-bound on x.  If the application tolerates it, cast `xp` and
    `w1_big` below to bfloat16 (keeping preferred_element_type=float32) to halve the
    dominant HBM traffic and hit the MXU's native bf16 path.
    """
    B, D = x.shape
    H = w1.shape[1]

    # Row-pack factor: P rows of x per packed row so a packed row spans P*D f32 lanes
    # (a multiple of 128 when possible) -> lane-dense streaming of x.
    P = 128 // math.gcd(D, 128)
    # Guard: the kron'd block-diagonal weights (P*D, P*H) must stay small enough to sit
    # resident in VMEM; shrinking P is always mathematically valid.
    while P > 1 and (P * D) * (P * H) * 4 > (4 << 20):
        P //= 2
    # TODO(synk): for very large input_dim/hidden_dim add a K/H grid axis instead of a
    # fully resident first-layer weight.

    Bp = _round_up(B, P)
    if Bp != B:
        # Pads at most P-1 rows (never a full tile); the extra rows are sliced off below.
        x = jnp.pad(x, ((0, Bp - B), (0, 0)))
    R = Bp // P
    xp = x.reshape(R, P * D)          # contiguous row-major reinterpret: no data movement

    eye = jnp.eye(P, dtype=w1.dtype)
    w1_big = jnp.kron(eye, w1)                    # (P*D, P*H) block-diagonal
    b1_big = jnp.tile(b1, P).reshape(1, P * H)    # (1, P*H)
    w2_big = jnp.kron(eye, w2)                    # (P*H, P)   block-diagonal
    b2_2d = b2.reshape(1, 1)

    # Batch tiling over packed rows.  Default tile_b=32768 original rows -> ~2 MiB of x
    # per grid step; total VMEM (2x x blocks, 2x out blocks, the h intermediate and the
    # resident weights) stays ~12-16 MiB: under the 32 MiB limit below and under v7x's
    # 64 MiB physical VMEM.
    tile_r = max(8, (tile_b // P) // 8 * 8)
    # Keep >=2 roughly balanced grid steps whenever there is enough work (v7x has two
    # TensorCores; a single grid step leaves one idle).
    tile_r = min(tile_r, _round_up(pl.cdiv(R, 2), 8))
    if tile_r >= R:
        tile_r = R                                # one full-extent block for tiny batches
    grid = (pl.cdiv(R, tile_r),)                  # ragged last block handled by Pallas

    kernel = functools.partial(_mlp_kernel, precision=precision)
    out = pl.pallas_call(
        kernel,
        out_shape=jax.ShapeDtypeStruct((R, P), jnp.float32),
        grid=grid,
        in_specs=[
            # x streams over the grid (auto double-buffered), lane-dense blocks.
            pl.BlockSpec((tile_r, P * D), lambda i: (i, 0)),
            # Weights/biases: constant index_map -> DMA'd once, resident in VMEM.
            pl.BlockSpec((P * D, P * H), lambda i: (0, 0)),
            pl.BlockSpec((1, P * H), lambda i: (0, 0)),
            pl.BlockSpec((P * H, P), lambda i: (0, 0)),
            # Scalar output bias in SMEM (no padded VMEM tile / extra DMA).
            pl.BlockSpec(memory_space=pltpu.MemorySpace.SMEM),
        ],
        out_specs=pl.BlockSpec((tile_r, P), lambda i: (i, 0)),
        compiler_params=pltpu.CompilerParams(
            # Independent batch tiles: lets Mosaic shard grid steps across both
            # TensorCores on v7x; harmless no-op on single-TC v5e/v6e.
            dimension_semantics=("parallel",),
            # Headroom above v5e's 16 MiB scoped default; <= physical on all gens.
            vmem_limit_bytes=32 * 1024 * 1024,
        ),
    )(xp, w1_big, b1_big, w2_big, b2_2d)

    # Packed (R, P) row-major order == original batch order: recovery is a free reshape.
    return out.reshape(Bp, 1)[:B]


def init_params(key, input_dim, hidden_dim):
    """Deterministic init mimicking torch.nn.Linear (uniform +/- 1/sqrt(fan_in))."""
    k1, k2, k3, k4 = jax.random.split(key, 4)
    bound1 = 1.0 / jnp.sqrt(input_dim)
    bound2 = 1.0 / jnp.sqrt(hidden_dim)
    w1 = jax.random.uniform(k1, (input_dim, hidden_dim), jnp.float32, -bound1, bound1)
    b1 = jax.random.uniform(k2, (hidden_dim,), jnp.float32, -bound1, bound1)
    w2 = jax.random.uniform(k3, (hidden_dim, 1), jnp.float32, -bound2, bound2)
    b2 = jax.random.uniform(k4, (1,), jnp.float32, -bound2, bound2)
    return w1, b1, w2, b2


if __name__ == "__main__":
    key = jax.random.PRNGKey(0)
    kx, kp, kx2 = jax.random.split(key, 3)

    # Small shapes consistent with the module (hidden_dim = 5 in the original script).
    batch, input_dim, hidden_dim = 8, 16, 5
    x = jax.random.normal(kx, (batch, input_dim), jnp.float32)
    w1, b1, w2, b2 = init_params(kp, input_dim, hidden_dim)

    out = jax.block_until_ready(linear_lag_forward(x, w1, b1, w2, b2))
    ref = jnp.maximum(x @ w1 + b1, 0.0) @ w2 + b2
    assert out.shape == (batch, 1)
    assert jnp.allclose(out, ref, atol=1e-5, rtol=1e-5)

    # Exercise multi-tile pipelining, the ragged last block, and a batch that is not a
    # multiple of the row-pack factor.
    batch2 = 84
    x2 = jax.random.normal(kx2, (batch2, input_dim), jnp.float32)
    out2 = jax.block_until_ready(linear_lag_forward(x2, w1, b1, w2, b2, tile_b=32))
    ref2 = jnp.maximum(x2 @ w1 + b1, 0.0) @ w2 + b2
    assert out2.shape == (batch2, 1)
    assert jnp.allclose(out2, ref2, atol=1e-5, rtol=1e-5)

    print("KERNEL_OK")
</pallas_src>

<mosaic_0001>
module attributes {stable_mosaic.version = 11 : i64} {
  func.func @_mlp_kernel(%arg0: i32, %arg1: memref<1x128xf32, #tpu.memory_space<vmem>>, %arg2: memref<128x40xf32, #tpu.memory_space<vmem>>, %arg3: memref<1x40xf32, #tpu.memory_space<vmem>>, %arg4: memref<40x8xf32, #tpu.memory_space<vmem>>, %arg5: memref<1x1xf32, #tpu.memory_space<smem>>, %arg6: memref<1x8xf32, #tpu.memory_space<vmem>>) attributes {dimension_semantics = [#tpu.dimension_semantics<parallel>], iteration_bounds = array<i64: 1>, scalar_prefetch = 0 : i64, scratch_operands = 0 : i64, tpu.core_type = #tpu.core_type<tc>, window_params = [{transform_indices = @transform_0, window_bounds = array<i64: 1, 128>}, {pipeline_mode = #tpu.pipeline_mode<synchronous>, transform_indices = @transform_1, window_bounds = array<i64: 128, 40>}, {pipeline_mode = #tpu.pipeline_mode<synchronous>, transform_indices = @transform_2, window_bounds = array<i64: 1, 40>}, {pipeline_mode = #tpu.pipeline_mode<synchronous>, transform_indices = @transform_3, window_bounds = array<i64: 40, 8>}, {transform_indices = @transform_4, window_bounds = array<i64: 1, 1>}, {transform_indices = @transform_5, window_bounds = array<i64: 1, 8>}]} {
    %c0 = arith.constant 0 : index
    %c0_0 = arith.constant 0 : index
    %0 = vector.load %arg1[%c0, %c0_0] : memref<1x128xf32, #tpu.memory_space<vmem>>, vector<1x128xf32>
    %c0_1 = arith.constant 0 : index
    %c0_2 = arith.constant 0 : index
    %1 = vector.load %arg2[%c0_1, %c0_2] : memref<128x40xf32, #tpu.memory_space<vmem>>, vector<128x40xf32>
    %cst = arith.constant dense<0.000000e+00> : vector<1x40xf32>
    %2 = tpu.matmul %0, %1, %cst {dimension_numbers = #tpu.dot_dimension_numbers<[1], [0], [0], [1], [0, 0, 1, 1], [], []>} : vector<1x128xf32>, vector<128x40xf32>, vector<1x40xf32> -> vector<1x40xf32>
    %c0_3 = arith.constant 0 : index
    %c0_4 = arith.constant 0 : index
    %3 = vector.load %arg3[%c0_3, %c0_4] : memref<1x40xf32, #tpu.memory_space<vmem>>, vector<1x40xf32>
    %4 = arith.addf %2, %3 : vector<1x40xf32>
    %cst_5 = arith.constant 0.000000e+00 : f32
    %5 = vector.broadcast %cst_5 : f32 to vector<1x40xf32>
    %6 = arith.maximumf %4, %5 : vector<1x40xf32>
    %c0_6 = arith.constant 0 : index
    %c0_7 = arith.constant 0 : index
    %7 = vector.load %arg4[%c0_6, %c0_7] : memref<40x8xf32, #tpu.memory_space<vmem>>, vector<40x8xf32>
    %cst_8 = arith.constant dense<0.000000e+00> : vector<1x8xf32>
    %8 = tpu.matmul %6, %7, %cst_8 {dimension_numbers = #tpu.dot_dimension_numbers<[1], [0], [0], [1], [0, 0, 1, 1], [], []>} : vector<1x40xf32>, vector<40x8xf32>, vector<1x8xf32> -> vector<1x8xf32>
    %c0_9 = arith.constant 0 : index
    %c0_10 = arith.constant 0 : index
    %9 = memref.load %arg5[%c0_9, %c0_10] : memref<1x1xf32, #tpu.memory_space<smem>>
    %10 = vector.broadcast %9 : f32 to vector<1x8xf32>
    %11 = arith.addf %8, %10 : vector<1x8xf32>
    %c0_11 = arith.constant 0 : index
    %c0_12 = arith.constant 0 : index
    %12 = vector.load %arg6[%c0_11, %c0_12] : memref<1x8xf32, #tpu.memory_space<vmem>>, vector<1x8xf32>
    tpu.vector_store %arg6[%c0_11, %c0_12], %11 {strides = array<i32>} : memref<1x8xf32, #tpu.memory_space<vmem>>, vector<1x8xf32>,
    return
  }
  func.func @transform_0(%arg0: i32) -> (i32, i32) {
    %c0_i32 = arith.constant 0 : i32
    %c0_i32_0 = arith.constant 0 : i32
    return %arg0, %c0_i32 : i32, i32
  }
  func.func @transform_1(%arg0: i32) -> (i32, i32) {
    %c0_i32 = arith.constant 0 : i32
    %c0_i32_0 = arith.constant 0 : i32
    %c0_i32_1 = arith.constant 0 : i32
    return %c0_i32, %c0_i32_0 : i32, i32
  }
  func.func @transform_2(%arg0: i32) -> (i32, i32) {
    %c0_i32 = arith.constant 0 : i32
    %c0_i32_0 = arith.constant 0 : i32
    %c0_i32_1 = arith.constant 0 : i32
    return %c0_i32, %c0_i32_0 : i32, i32
  }
  func.func @transform_3(%arg0: i32) -> (i32, i32) {
    %c0_i32 = arith.constant 0 : i32
    %c0_i32_0 = arith.constant 0 : i32
    %c0_i32_1 = arith.constant 0 : i32
    return %c0_i32, %c0_i32_0 : i32, i32
  }
  func.func @transform_4(%arg0: i32) -> (i32, i32) {
    %c0_i32 = arith.constant 0 : i32
    %c0_i32_0 = arith.constant 0 : i32
    %c0_i32_1 = arith.constant 0 : i32
    return %c0_i32, %c0_i32_0 : i32, i32
  }
  func.func @transform_5(%arg0: i32) -> (i32, i32) {
    %c0_i32 = arith.constant 0 : i32
    %c0_i32_0 = arith.constant 0 : i32
    return %arg0, %c0_i32 : i32, i32
  }
}

</mosaic_0001>

<bundles_post_ra>
// kernel: tpu_custom_call.1
= control target key start
LH: loop header
LB: loop body
LE: loop exit
PB: predicated region body
PF: predicated region fallthrough
CT: control target
= control target key end

     0   :  { %v338_v3 = vmov 0.0|0.0   ;;  %vm339_vm0 = vmmov 0   ;;  %v340_v6 = vmov 0.0   ;;  %s456_s0 = inlined_call_operand.vmem [shape: f32[1,128], index: 0, kind: input, shape index: {}]   ;;  %s457_s1 = inlined_call_operand.vmem [shape: f32[128,40], index: 1, kind: input, shape index: {}]   ;;  %s458_s2 = inlined_call_operand.vmem [shape: f32[1,40], index: 2, kind: input, shape index: {}]   ;;  %s459_s3 = inlined_call_operand.vmem [shape: f32[40,8], index: 3, kind: input, shape index: {}]   ;;  %s460_s4 = inlined_call_operand.<no memory space> [shape: f32[1,1], index: 4, kind: input, shape index: {}]   ;;  %s461_s5 = inlined_call_operand.hbm [shape: f32[1,8], index: 5, kind: output, shape index: {}]  }
   0x1   :  { %v23_v0 = vld [vmem:[%s457_s1] sm:$0xff]  ;;  %v24_v1 = vld [vmem:[%s457_s1 + $0x8] sm:$0xff]  ;;  %v25_v2 = vld [vmem:[%s457_s1 + $0x10] sm:$0xff]  ;;  %280 = vmatprep.subr.bf16.mxu0 %v338_v3  ;;  %264 = vmatprep.mubr.msk.f32.mxu0 %vm339_vm0, %v340_v6 }
   0x2   :  { %v281_v4 = vpack.c.bf16 %v24_v1, %v23_v0  ;;  %v26_v5 = vld [vmem:[%s457_s1 + $0x18] sm:$0xff]  ;;  %304 = vmatprep.subr.bf16.mxu1 %v338_v3  ;;  %277 = vmatprep.mubr.msk.f32.mxu1 %vm339_vm0, %v340_v6  ;;  %v27_v8 = vld [vmem:[%s457_s1 + $0x20] sm:$0xff]  ;;  %v28_v9 = vld [vmem:[%s457_s1 + $0x28] sm:$0xff] }
   0x3   :  { %v284_v7 = vpack.c.bf16 %v26_v5, %v25_v2  ;;  %v111_v10 = vld [vmem:[%s459_s3] sm:$0xff]  ;;  %v112_v11 = vld [vmem:[%s459_s3 + $0x8] sm:$0xff] }
   0x4   :  { %282 = vmatpush3.bf16.msra.mxu0 %v281_v4 }
   0x5   :  { %283 = vmatprep.subr.bf16.mxu0 %v338_v3 }
   0x6   :  { %11 = vsyncpa [#allocation4], 0  ;;  %v287_v12 = vpack.c.bf16 %v28_v9, %v27_v8  ;;  %v305_v13 = vpack.c.bf16 %v112_v11, %v111_v10  ;;  %v29_v14 = vld [vmem:[%s457_s1 + $0x30] sm:$0xff]  ;;  %v30_v15 = vld [vmem:[%s457_s1 + $0x38] sm:$0xff]  ;;  %vm118_vm1 = vcmask 326656   ;;  %v117_v39 = vstv %s460_s4  ;;  %s341_s14 = smov [#allocation3]  }
   0x7   :  { %v290_v16 = vpack.c.bf16 %v30_v15, %v29_v14  ;;  %v31_v17 = vld [vmem:[%s457_s1 + $0x40] sm:$0xff]  ;;  %v32_v18 = vld [vmem:[%s457_s1 + $0x48] sm:$0xff]  ;;  %v33_v20 = vld [vmem:[%s457_s1 + $0x50] sm:$0xff]  ;;  %s200_s15 = sshll.u32 %s341_s14, 4  ;;  %vm192_vm2 = vcmask 57344   ;;  %s201_s15 = int_to_ptr.vmem [resolvable:$true] %s200_s15 }
   0x8   :  { %285 = vmatpush3.bf16.msra.mxu0 %v284_v7  ;;  %306 = vmatpush3.bf16.msra.mxu1 %v305_v13  ;;  %v293_v19 = vpack.c.bf16 %v32_v18, %v31_v17  ;;  %v34_v21 = vld [vmem:[%s457_s1 + $0x58] sm:$0xff]  ;;  %v35_v23 = vld [vmem:[%s457_s1 + $0x60] sm:$0xff]  ;;  %v36_v24 = vld [vmem:[%s457_s1 + $0x68] sm:$0xff]  ;;  %p319_p1 = scmp.lt.s32.totalorder %s201_s15, %s201_s15 }
   0x9   :  { %286 = vmatprep.subr.bf16.mxu0 %v338_v3  ;;  %307 = vmatprep.subr.bf16.mxu1 %v338_v3  ;;  %v296_v22 = vpack.c.bf16 %v34_v21, %v33_v20  ;;  %v299_v25 = vpack.c.bf16 %v36_v24, %v35_v23  ;;  %v37_v26 = vld [vmem:[%s457_s1 + $0x70] sm:$0xff]  ;;  %v38_v27 = vld [vmem:[%s457_s1 + $0x78] sm:$0xff]  ;;  %v22_v29 = vld [vmem:[%s456_s0] sm:$0x1] }
   0xa   :  { %v302_v28 = vpack.c.bf16 %v38_v27, %v37_v26  ;;  %v113_v30 = vld [vmem:[%s459_s3 + $0x10] sm:$0xff]  ;;  %v114_v31 = vld [vmem:[%s459_s3 + $0x18] sm:$0xff]  ;;  %v115_v33 = vld [vmem:[%s459_s3 + $0x20] sm:$0xff]  ;;  %s314_s3 = scalar_lea.vmem %s201_s15, 16 }
   0xb   :  { %v308_v32 = vpack.c.bf16 %v114_v31, %v113_v30  ;;  %v39_v34 = vld [vmem:[%s458_s2] sm:$0x1]  ;;  %p315_p0 = scmp.ne.s32.totalorder %s201_s15, %s314_s3  ;;  %s318_s2 = scalar_lea.vmem %s201_s15, 32 }
   0xc   :  { %288 = vmatpush3.bf16.msra.mxu0 %v287_v12  ;;  %p320_p2 = scmp.lt.s32.totalorder %s318_s2, %s314_s3 }
   0xd   :  { %289 = vmatprep.subr.bf16.mxu0 %v338_v3  ;;  %309 = vmatpush3.bf16.msra.mxu1 %v308_v32 }
   0xe   :  { %275 = vmatprep.subr.mxu1 %v340_v6  ;;  %p321_p3 = por %p320_p2, %p319_p1 }
  0x10   :  { %291 = vmatpush3.bf16.msra.mxu0 %v290_v16  ;;  %p322_p4 = pnand %p321_p3, %p315_p0 }
  0x11   :  { %292 = vmatprep.subr.bf16.mxu0 %v338_v3  ;;  %276 = vmatpush3.msra.mxu1 %v115_v33 }
  0x14   :  { %294 = vmatpush3.bf16.msra.mxu0 %v293_v19 }
  0x15   :  { %295 = vmatprep.subr.bf16.mxu0 %v338_v3 }
  0x18   :  { %297 = vmatpush3.bf16.msra.mxu0 %v296_v22 }
  0x19   :  { %298 = vmatprep.subr.bf16.mxu0 %v338_v3 }
  0x1c   :  { %300 = vmatpush3.bf16.msra.mxu0 %v299_v25 }
  0x1d   :  { %301 = vmatprep.subr.bf16.mxu0 %v338_v3 }
  0x20   :  { %303 = vmatpush3.bf16.msra.mxu0 %v302_v28 }
  0x23   :  { %265 = vmatmul.mubr.f32.vlgmr.msra.gmra.mrb[0].mxu0 %v22_v29 }
  0xf6   :  { %v106_v35 = vpop.f32.mrb[0].mxu0 }
  0xf7   :  { %v107_v36 = vadd.f32 %v106_v35, %v39_v34  ;;  %v266_v37 = vpop.f32.mrb[1].mxu0 }
  0xf9   :  { %v110_v38 = vmax.f32 %v107_v36, 0.0 }
  0xfb   :  { %278 = vmatmul.mubr.msk.f32.vlgmr.msra.gmra.mrb[0].mxu1 %vm118_vm1, %v110_v38 }
 0x1ce   :  { %v188_v40 = vpop.f32.mrb[0].mxu1 }
 0x1cf   :  { %v189_v41 = vadd.f32 %v188_v40, %v117_v39  ;;  %v279_v42 = vpop.f32.mrb[1].mxu1 }
 0x1d1   :  { %193 = vst.msk [vmem:[#allocation3] sm:$0x1] %vm192_vm2, %v189_v41 }
 0x1d2   :  { %325 = shalt.err (!%p322_p4)
}
 0x1d3   :  { %s326_s4 = scalar_lea.hbm %s461_s5, 16 }
 0x1d4   :  { %p327_p5 = scmp.ne.s32.totalorder %s461_s5, %s326_s4  ;;  %p330_p6 = scmp.lt.u32.totalorder %s326_s4, %s461_s5 }
 0x1d6   :  { %p332_p7 = pnand %p330_p6, %p327_p5 }
 0x1d8   :  { %335 = shalt.err (!%p332_p7)
}
 0x1d9   :  { %203 = dma.vmem_to_hbm [thread:$0]  %s201_s15, 16, %s461_s5, [#allocation4]  }
 0x1da   :  { %336 = dma.done.wait [#allocation4], 16  }
 0x1db   :  { %337 = vsyncadd [#allocation4], 4294967280 }
 0x1dc   :  { %207 = vsyncpa [#allocation4], 1 }

</bundles_post_ra>
